<compile_context>
chip_gen: v6e
topology: v6e:2x2x1
jax: 0.10.0
libtpu: 0.0.40
codegen_flags: <defaults>
</compile_context>

<pallas_src>
import functools

import jax
import jax.numpy as jnp
from jax import lax
from jax.experimental import pallas as pl
from jax.experimental.pallas import tpu as pltpu

DIVISOR = 800.0 * 800.0      # hardcoded "/ (800 * 800)" in the reference forward()
IGNORE_LABEL = 255           # cfg.DATASET.IGNORE_LABEL

_MAX_BLK = 32768             # absolute cap on the lane block


def _vmem_budgets():
    """(block-sizing budget, scoped vmem limit) gated on the chip's VMEM capacity."""
    cap = None
    try:
        get_info = getattr(pltpu, "get_tpu_info", None)
        if get_info is not None:
            cap = getattr(get_info(), "vmem_capacity_bytes", None)
    except Exception:
        cap = None
    if cap is not None and cap >= 100 * 1024 * 1024:
        # v5e / v6e: 128 MiB physical VMEM -> bigger blocks, fewer grid steps.
        return 32 * 1024 * 1024, 64 * 1024 * 1024
    # v7x (64 MiB physical) or unknown: keep headroom; v7x is compute-bound anyway.
    return 20 * 1024 * 1024, 48 * 1024 * 1024


def _pick_blk(hw, c, in_itemsize, sizing_budget):
    """Largest 128*2^k lane block whose estimated VMEM footprint fits the budget."""
    rounded_hw = pl.cdiv(hw, 128) * 128
    c_pad = pl.cdiv(c, 8) * 8   # f32 temporaries occupy sublane-padded rows
    # Per lane-column: double-buffered logits (+ targets/edges) blocks plus roughly
    # six f32 (C_pad, blk) temporaries for the softmax / select chain.
    bytes_per_col = c_pad * (2 * in_itemsize + 24) + 16
    max_cols = max(128, sizing_budget // bytes_per_col)
    blk = 128
    while blk * 2 <= min(max_cols, _MAX_BLK, rounded_hw):
        blk *= 2
    return blk


def _fold_to_128(v):
    """Sum lane-aligned 128-wide column slices of (R, 128*2^k) down to (R, 128)."""
    w = v.shape[-1]
    while w > 128:
        w //= 2
        v = v[:, :w] + v[:, w:]
    return v


def _ewce_kernel(x_ref, t_ref, e_ref, nll_ref, cnt_ref, edge_ref, *,
                 hw, ignore_index):
    s_ax = pl.program_id(1)          # spatial split index
    b = pl.program_id(2)             # block index within the split
    num_classes, blk = x_ref.shape[-2], x_ref.shape[-1]

    # Outputs double as accumulators (resident across the inner "arbitrary" axis).
    @pl.when(b == 0)
    def _():
        nll_ref[...] = jnp.zeros_like(nll_ref)
        cnt_ref[...] = jnp.zeros_like(cnt_ref)
        edge_ref[...] = jnp.zeros_like(edge_ref)

    x = x_ref[0].astype(jnp.float32)   # (C, blk)  bf16/f32 logits, upcast in-kernel
    t = t_ref[0].astype(jnp.int32)     # (1, blk)  labels (any int dtype accepted)
    e = e_ref[0].astype(jnp.float32)   # (1, blk)  edge map

    # Global (unclamped) lane offset of this block. Tail lanes of the clipped last
    # block -- and the whole duplicated (index-clamped) trailing block of the last
    # split -- hold garbage and are masked out of every accumulation.
    gblk = s_ax * pl.num_programs(2) + b
    col = lax.broadcasted_iota(jnp.int32, (1, blk), 1)
    valid = (gblk * blk + col) < hw                              # (1, blk)

    # log_softmax over the class (sublane) axis == F.log_softmax(..., dim=1) in NCHW.
    m = jnp.max(x, axis=0, keepdims=True)
    z = x - m
    lse = jnp.log(jnp.sum(jnp.exp(z), axis=0, keepdims=True))    # (1, blk)

    # Lane-constant class iota; broadcast inside the compare (no (C, blk) iota temp).
    ci = lax.broadcasted_iota(jnp.int32, (num_classes, 1), 0)    # (C, 1)

    # Remap tail lanes to an unmatchable label: one (1, blk) op instead of a
    # (C, blk) logical_and.
    t_eff = jnp.where(valid, t, num_classes)                     # (1, blk)
    match = ci == t_eff                                          # (C, blk) histogram mask
    if ignore_index >= num_classes:
        # Fused path (default ignore=255): ignore labels never match ci in [0, C),
        # so the same compare serves both histogram and NLL.
        nll_sel = match
    else:
        # Reference keeps ignore pixels in the histogram when ignore_index < C,
        # but excludes them from the NLL.
        nll_sel = jnp.logical_and(match, t != ignore_index)

    # -log p[target] = lse - z (negate folded into the select); the select keeps
    # garbage-tail Inf/NaN out of the accumulator (do NOT replace with a multiply).
    contrib = jnp.where(nll_sel, lse - z, 0.0)                   # (C, blk)
    cnt = match.astype(jnp.float32)                              # (C, blk)
    ev = jnp.where(valid, e, 0.0)                                # (1, blk)

    # Per-step fold into (.., 128) accumulators (cuts accumulator traffic blk/128x).
    nll_ref[0, 0] = nll_ref[0, 0] + _fold_to_128(contrib)
    cnt_ref[0, 0] = cnt_ref[0, 0] + _fold_to_128(cnt)
    edge_ref[0, 0] = edge_ref[0, 0] + _fold_to_128(ev)


def edge_weighted_cross_entropy_loss_2d(logits, targets, edges, *, num_classes,
                                        ignore_index=IGNORE_LABEL, upper_bound=1.0,
                                        norm=False, blk=None, splits=None):
    N, C, H, W = logits.shape
    assert C == num_classes
    HW = H * W

    sizing_budget, vmem_limit = _vmem_budgets()
    if blk is None:
        blk = _pick_blk(HW, C, jnp.dtype(logits.dtype).itemsize, sizing_budget)
    else:
        b2 = 128
        while b2 * 2 <= int(blk):
            b2 *= 2
        blk = b2                      # normalize to 128 * 2^k for the fold
    nb_total = pl.cdiv(HW, blk)

    # 2-way spatial split: feeds both TensorCores on v7x even when N == 1; a
    # (nearly) free extra grid axis on single-TC v5e/v6e. Each split must own at
    # least one in-bounds block.
    if splits is None:
        splits = 2
    splits = max(1, min(int(splits), nb_total))
    nb_per = pl.cdiv(nb_total, splits)
    while splits > 1 and (splits - 1) * nb_per >= nb_total:
        splits -= 1
        nb_per = pl.cdiv(nb_total, splits)

    # Free reshapes only -- no pad, no dtype cast: tail masking and upcasting happen
    # inside the kernel, so each input is read from HBM exactly once.
    x = logits.reshape(N, C, HW)
    t = targets.reshape(N, 1, HW)
    e = edges.reshape(N, 1, HW)

    kernel = functools.partial(_ewce_kernel, hw=HW, ignore_index=int(ignore_index))

    last_blk = nb_total - 1

    def in_map(n, s, b):
        # Clamp so a trailing block of the last split (when splits*nb_per > nb_total)
        # re-reads the last real block instead of issuing an out-of-bounds DMA; its
        # lanes are all masked out in-kernel via the unclamped global offset.
        return (n, 0, jnp.minimum(s * nb_per + b, last_blk))

    nll_p, cnt_p, edge_p = pl.pallas_call(
        kernel,
        out_shape=(
            jax.ShapeDtypeStruct((N, splits, C, 128), jnp.float32),  # per-class -log p sums
            jax.ShapeDtypeStruct((N, splits, C, 128), jnp.float32),  # per-class histogram
            jax.ShapeDtypeStruct((N, splits, 1, 128), jnp.float32),  # edge-map sum
        ),
        grid_spec=pltpu.PrefetchScalarGridSpec(
            num_scalar_prefetch=0,
            grid=(N, splits, nb_per),
            in_specs=[
                pl.BlockSpec((1, C, blk), in_map),
                pl.BlockSpec((1, 1, blk), in_map),
                pl.BlockSpec((1, 1, blk), in_map),
            ],
            out_specs=[
                pl.BlockSpec((1, 1, C, 128), lambda n, s, b: (n, s, 0, 0)),
                pl.BlockSpec((1, 1, C, 128), lambda n, s, b: (n, s, 0, 0)),
                pl.BlockSpec((1, 1, 1, 128), lambda n, s, b: (n, s, 0, 0)),
            ],
        ),
        compiler_params=pltpu.CompilerParams(
            dimension_semantics=("parallel", "parallel", "arbitrary"),
            vmem_limit_bytes=vmem_limit),
    )(x, t, e)

    # Tiny per-image epilogue in JAX: combine split/lane partials, build the
    # per-image histogram weights, and apply the reference reduction.
    s_c = jnp.sum(nll_p, axis=(1, 3))            # (N, C)
    counts = jnp.sum(cnt_p, axis=(1, 3))         # (N, C)
    edge_sum = jnp.sum(edge_p, axis=(1, 2, 3))   # (N,)

    total = jnp.sum(counts, axis=1, keepdims=True)
    total = jnp.where(total > 0.0, total, 1.0)
    # np.histogram(..., bins=range(C+1), normed=True): unit bin width ->
    # density == counts / num_counted_labels.
    freq = counts / total
    nz = (freq != 0.0).astype(jnp.float32)
    if norm:
        w = nz * upper_bound * (1.0 / jnp.where(freq != 0.0, freq, 1.0)) + 1.0
    else:
        w = nz * upper_bound * (1.0 - freq) + 1.0
    nll_sum = jnp.sum(w * s_c, axis=1)           # NLLLoss(weight, reduction='sum') per image
    return jnp.sum(nll_sum * edge_sum / DIVISOR)


def _reference_loss(logits, targets, edges, *, num_classes,
                    ignore_index=IGNORE_LABEL, upper_bound=1.0, norm=False):
    """Pure-JAX reference mirroring the PyTorch module (per-image weights, sum NLL)."""
    N, C, H, W = logits.shape
    logp = jax.nn.log_softmax(logits.astype(jnp.float32), axis=1).reshape(N, C, H * W)
    t = targets.reshape(N, H * W)
    e = edges.reshape(N, H * W).astype(jnp.float32)
    loss = jnp.float32(0.0)
    for i in range(N):
        ti = t[i]
        counts = jnp.stack(
            [jnp.sum((ti == c).astype(jnp.float32)) for c in range(num_classes)])
        total = jnp.maximum(jnp.sum(counts), 1.0)
        freq = counts / total
        nz = (freq != 0.0).astype(jnp.float32)
        if norm:
            w = nz * upper_bound * (1.0 / jnp.where(freq != 0.0, freq, 1.0)) + 1.0
        else:
            w = nz * upper_bound * (1.0 - freq) + 1.0
        validm = (ti != ignore_index) & (ti >= 0) & (ti < num_classes)
        tc = jnp.where(validm, ti, 0)
        lp_t = jnp.take_along_axis(logp[i], tc[None, :], axis=0)[0]
        nll = jnp.sum(jnp.where(validm, -w[tc] * lp_t, 0.0))
        loss = loss + nll * jnp.sum(e[i]) / DIVISOR
    return loss


if __name__ == "__main__":
    key = jax.random.PRNGKey(0)
    k1, k2, k3, k4, k5, k6 = jax.random.split(key, 6)

    # Case 1: small, single block per image, f32 logits.
    N, C, H, W = 2, 4, 16, 16
    logits = jax.random.normal(k1, (N, C, H, W), dtype=jnp.float32)
    targets = jax.random.randint(k2, (N, H, W), 0, C, dtype=jnp.int32)
    targets = targets.at[:, :2, :2].set(IGNORE_LABEL)   # sprinkle ignore pixels
    edges = jax.random.uniform(k3, (N, H, W), dtype=jnp.float32)

    loss = edge_weighted_cross_entropy_loss_2d(
        logits, targets, edges, num_classes=C,
        ignore_index=IGNORE_LABEL, upper_bound=1.0, norm=False)
    jax.block_until_ready(loss)
    ref = _reference_loss(logits, targets, edges, num_classes=C)
    assert jnp.allclose(loss, ref, rtol=1e-3, atol=1e-5), (loss, ref)

    # Case 2: bf16 logits, multi-block, 2-way spatial split, clipped tail block and
    # a duplicated (index-clamped) trailing block (odd number of blocks).
    N2, C2, H2, W2 = 1, 4, 43, 43
    logits2 = jax.random.normal(k4, (N2, C2, H2, W2), dtype=jnp.bfloat16)
    targets2 = jax.random.randint(k5, (N2, H2, W2), 0, C2, dtype=jnp.int32)
    targets2 = targets2.at[:, :3, :].set(IGNORE_LABEL)
    edges2 = jax.random.uniform(k6, (N2, H2, W2), dtype=jnp.float32)

    loss2 = edge_weighted_cross_entropy_loss_2d(
        logits2, targets2, edges2, num_classes=C2,
        ignore_index=IGNORE_LABEL, upper_bound=1.0, norm=False,
        blk=128, splits=2)
    jax.block_until_ready(loss2)
    ref2 = _reference_loss(logits2, targets2, edges2, num_classes=C2)
    assert jnp.allclose(loss2, ref2, rtol=1e-3, atol=1e-4), (loss2, ref2)

    print("KERNEL_OK")
</pallas_src>

<mosaic_0001>
module attributes {stable_mosaic.version = 11 : i64} {
  func.func @_ewce_kernel(%arg0: i32, %arg1: i32, %arg2: i32, %arg3: memref<1x4x256xf32, #tpu.memory_space<vmem>>, %arg4: memref<1x1x256xi32, #tpu.memory_space<vmem>>, %arg5: memref<1x1x256xf32, #tpu.memory_space<vmem>>, %arg6: memref<1x1x4x128xf32, #tpu.memory_space<vmem>>, %arg7: memref<1x1x4x128xf32, #tpu.memory_space<vmem>>, %arg8: memref<1x1x1x128xf32, #tpu.memory_space<vmem>>) attributes {dimension_semantics = [#tpu.dimension_semantics<parallel>, #tpu.dimension_semantics<parallel>, #tpu.dimension_semantics<arbitrary>], iteration_bounds = array<i64: 2, 1, 1>, scalar_prefetch = 0 : i64, scratch_operands = 0 : i64, tpu.core_type = #tpu.core_type<tc>, window_params = [{transform_indices = @transform_0, window_bounds = array<i64: 1, 4, 256>}, {transform_indices = @transform_1, window_bounds = array<i64: 1, 1, 256>}, {transform_indices = @transform_2, window_bounds = array<i64: 1, 1, 256>}, {transform_indices = @transform_3, window_bounds = array<i64: 1, 1, 4, 128>}, {transform_indices = @transform_4, window_bounds = array<i64: 1, 1, 4, 128>}, {transform_indices = @transform_5, window_bounds = array<i64: 1, 1, 1, 128>}]} {
    %c0_i32 = arith.constant 0 : i32
    %0 = arith.cmpi eq, %arg2, %c0_i32 : i32
    %1 = arith.extui %0 : i1 to i32
    %c0_i32_0 = arith.constant 0 : i32
    %2 = arith.cmpi ne, %1, %c0_i32_0 : i32
    scf.if %2 {
      %cst_37 = arith.constant 0.000000e+00 : f32
      %66 = vector.broadcast %cst_37 : f32 to vector<1x1x4x128xf32>
      %c0_38 = arith.constant 0 : index
      %c0_39 = arith.constant 0 : index
      %c0_40 = arith.constant 0 : index
      %c0_41 = arith.constant 0 : index
      %67 = vector.load %arg6[%c0_38, %c0_39, %c0_40, %c0_41] : memref<1x1x4x128xf32, #tpu.memory_space<vmem>>, vector<1x1x4x128xf32>
      tpu.vector_store %arg6[%c0_38, %c0_39, %c0_40, %c0_41], %66 {strides = array<i32>} : memref<1x1x4x128xf32, #tpu.memory_space<vmem>>, vector<1x1x4x128xf32>,
      %cst_42 = arith.constant 0.000000e+00 : f32
      %68 = vector.broadcast %cst_42 : f32 to vector<1x1x4x128xf32>
      %c0_43 = arith.constant 0 : index
      %c0_44 = arith.constant 0 : index
      %c0_45 = arith.constant 0 : index
      %c0_46 = arith.constant 0 : index
      %69 = vector.load %arg7[%c0_43, %c0_44, %c0_45, %c0_46] : memref<1x1x4x128xf32, #tpu.memory_space<vmem>>, vector<1x1x4x128xf32>
      tpu.vector_store %arg7[%c0_43, %c0_44, %c0_45, %c0_46], %68 {strides = array<i32>} : memref<1x1x4x128xf32, #tpu.memory_space<vmem>>, vector<1x1x4x128xf32>,
      %cst_47 = arith.constant 0.000000e+00 : f32
      %70 = vector.broadcast %cst_47 : f32 to vector<1x1x1x128xf32>
      %c0_48 = arith.constant 0 : index
      %c0_49 = arith.constant 0 : index
      %c0_50 = arith.constant 0 : index
      %c0_51 = arith.constant 0 : index
      %71 = vector.load %arg8[%c0_48, %c0_49, %c0_50, %c0_51] : memref<1x1x1x128xf32, #tpu.memory_space<vmem>>, vector<1x1x1x128xf32>
      tpu.vector_store %arg8[%c0_48, %c0_49, %c0_50, %c0_51], %70 {strides = array<i32>} : memref<1x1x1x128xf32, #tpu.memory_space<vmem>>, vector<1x1x1x128xf32>,
    } else {
    }
    %c0 = arith.constant 0 : index
    %c0_1 = arith.constant 0 : index
    %c0_2 = arith.constant 0 : index
    %3 = vector.load %arg3[%c0, %c0_1, %c0_2] : memref<1x4x256xf32, #tpu.memory_space<vmem>>, vector<1x4x256xf32>
    %4 = vector.shape_cast %3 : vector<1x4x256xf32> to vector<4x256xf32>
    %c0_3 = arith.constant 0 : index
    %c0_4 = arith.constant 0 : index
    %c0_5 = arith.constant 0 : index
    %5 = vector.load %arg4[%c0_3, %c0_4, %c0_5] : memref<1x1x256xi32, #tpu.memory_space<vmem>>, vector<1x1x256xi32>
    %6 = vector.shape_cast %5 : vector<1x1x256xi32> to vector<1x256xi32>
    %c0_6 = arith.constant 0 : index
    %c0_7 = arith.constant 0 : index
    %c0_8 = arith.constant 0 : index
    %7 = vector.load %arg5[%c0_6, %c0_7, %c0_8] : memref<1x1x256xf32, #tpu.memory_space<vmem>>, vector<1x1x256xf32>
    %8 = vector.shape_cast %7 : vector<1x1x256xf32> to vector<1x256xf32>
    %c1_i32 = arith.constant 1 : i32
    %9 = arith.muli %arg1, %c1_i32 : i32
    %10 = arith.addi %9, %arg2 : i32
    %11 = tpu.iota {dimensions = array<i32: 1>} : vector<1x256xi32>
    %c256_i32 = arith.constant 256 : i32
    %12 = arith.muli %10, %c256_i32 : i32
    %13 = vector.broadcast %12 : i32 to vector<1x256xi32>
    %14 = arith.addi %13, %11 : vector<1x256xi32>
    %c256_i32_9 = arith.constant 256 : i32
    %15 = vector.broadcast %c256_i32_9 : i32 to vector<1x256xi32>
    %16 = arith.cmpi slt, %14, %15 : vector<1x256xi32>
    %cst = arith.constant dense<0xFF800000> : vector<256xf32>
    %17 = vector.multi_reduction <maximumf>, %4, %cst [0] : vector<4x256xf32> to vector<256xf32>
    %18 = vector.shape_cast %17 : vector<256xf32> to vector<1x256xf32>
    %19 = vector.broadcast %18 : vector<1x256xf32> to vector<4x256xf32>
    %20 = arith.subf %4, %19 : vector<4x256xf32>
    %21 = math.exp %20 : vector<4x256xf32>
    %cst_10 = arith.constant dense<0.000000e+00> : vector<256xf32>
    %22 = vector.multi_reduction <add>, %21, %cst_10 [0] : vector<4x256xf32> to vector<256xf32>
    %23 = vector.shape_cast %22 : vector<256xf32> to vector<1x256xf32>
    %24 = math.log %23 : vector<1x256xf32>
    %25 = tpu.iota {dimensions = array<i32: 0>} : vector<4x1xi32>
    %c4_i32 = arith.constant 4 : i32
    %26 = vector.broadcast %c4_i32 : i32 to vector<1x256xi32>
    %27 = arith.select %16, %6, %26 : vector<1x256xi1>, vector<1x256xi32>
    %28 = vector.broadcast %25 : vector<4x1xi32> to vector<4x256xi32>
    %29 = vector.broadcast %27 : vector<1x256xi32> to vector<4x256xi32>
    %30 = arith.cmpi eq, %28, %29 : vector<4x256xi32>
    %31 = vector.broadcast %24 : vector<1x256xf32> to vector<4x256xf32>
    %32 = arith.subf %31, %20 : vector<4x256xf32>
    %cst_11 = arith.constant 0.000000e+00 : f32
    %33 = vector.broadcast %cst_11 : f32 to vector<4x256xf32>
    %34 = arith.select %30, %32, %33 : vector<4x256xi1>, vector<4x256xf32>
    %35 = arith.extui %30 : vector<4x256xi1> to vector<4x256xi32>
    %36 = arith.sitofp %35 : vector<4x256xi32> to vector<4x256xf32>
    %cst_12 = arith.constant 0.000000e+00 : f32
    %37 = vector.broadcast %cst_12 : f32 to vector<1x256xf32>
    %38 = arith.select %16, %8, %37 : vector<1x256xi1>, vector<1x256xf32>
    %c0_13 = arith.constant 0 : index
    %c0_14 = arith.constant 0 : index
    %c0_15 = arith.constant 0 : index
    %c0_16 = arith.constant 0 : index
    %39 = vector.load %arg6[%c0_13, %c0_14, %c0_15, %c0_16] : memref<1x1x4x128xf32, #tpu.memory_space<vmem>>, vector<1x1x4x128xf32>
    %40 = vector.shape_cast %39 : vector<1x1x4x128xf32> to vector<4x128xf32>
    %41 = vector.extract_strided_slice %34 {offsets = [0, 0], sizes = [4, 128], strides = [1, 1]} : vector<4x256xf32> to vector<4x128xf32>
    %42 = vector.extract_strided_slice %34 {offsets = [0, 128], sizes = [4, 128], strides = [1, 1]} : vector<4x256xf32> to vector<4x128xf32>
    %43 = arith.addf %41, %42 : vector<4x128xf32>
    %44 = arith.addf %40, %43 : vector<4x128xf32>
    %c0_17 = arith.constant 0 : index
    %c0_18 = arith.constant 0 : index
    %c0_19 = arith.constant 0 : index
    %c0_20 = arith.constant 0 : index
    %45 = vector.load %arg6[%c0_17, %c0_18, %c0_19, %c0_20] : memref<1x1x4x128xf32, #tpu.memory_space<vmem>>, vector<1x1x4x128xf32>
    %46 = vector.shape_cast %45 : vector<1x1x4x128xf32> to vector<4x128xf32>
    %47 = vector.shape_cast %44 : vector<4x128xf32> to vector<1x1x4x128xf32>
    tpu.vector_store %arg6[%c0_17, %c0_18, %c0_19, %c0_20], %47 {strides = array<i32>} : memref<1x1x4x128xf32, #tpu.memory_space<vmem>>, vector<1x1x4x128xf32>,
    %c0_21 = arith.constant 0 : index
    %c0_22 = arith.constant 0 : index
    %c0_23 = arith.constant 0 : index
    %c0_24 = arith.constant 0 : index
    %48 = vector.load %arg7[%c0_21, %c0_22, %c0_23, %c0_24] : memref<1x1x4x128xf32, #tpu.memory_space<vmem>>, vector<1x1x4x128xf32>
    %49 = vector.shape_cast %48 : vector<1x1x4x128xf32> to vector<4x128xf32>
    %50 = vector.extract_strided_slice %36 {offsets = [0, 0], sizes = [4, 128], strides = [1, 1]} : vector<4x256xf32> to vector<4x128xf32>
    %51 = vector.extract_strided_slice %36 {offsets = [0, 128], sizes = [4, 128], strides = [1, 1]} : vector<4x256xf32> to vector<4x128xf32>
    %52 = arith.addf %50, %51 : vector<4x128xf32>
    %53 = arith.addf %49, %52 : vector<4x128xf32>
    %c0_25 = arith.constant 0 : index
    %c0_26 = arith.constant 0 : index
    %c0_27 = arith.constant 0 : index
    %c0_28 = arith.constant 0 : index
    %54 = vector.load %arg7[%c0_25, %c0_26, %c0_27, %c0_28] : memref<1x1x4x128xf32, #tpu.memory_space<vmem>>, vector<1x1x4x128xf32>
    %55 = vector.shape_cast %54 : vector<1x1x4x128xf32> to vector<4x128xf32>
    %56 = vector.shape_cast %53 : vector<4x128xf32> to vector<1x1x4x128xf32>
    tpu.vector_store %arg7[%c0_25, %c0_26, %c0_27, %c0_28], %56 {strides = array<i32>} : memref<1x1x4x128xf32, #tpu.memory_space<vmem>>, vector<1x1x4x128xf32>,
    %c0_29 = arith.constant 0 : index
    %c0_30 = arith.constant 0 : index
    %c0_31 = arith.constant 0 : index
    %c0_32 = arith.constant 0 : index
    %57 = vector.load %arg8[%c0_29, %c0_30, %c0_31, %c0_32] : memref<1x1x1x128xf32, #tpu.memory_space<vmem>>, vector<1x1x1x128xf32>
    %58 = vector.shape_cast %57 : vector<1x1x1x128xf32> to vector<1x128xf32>
    %59 = vector.extract_strided_slice %38 {offsets = [0, 0], sizes = [1, 128], strides = [1, 1]} : vector<1x256xf32> to vector<1x128xf32>
    %60 = vector.extract_strided_slice %38 {offsets = [0, 128], sizes = [1, 128], strides = [1, 1]} : vector<1x256xf32> to vector<1x128xf32>
    %61 = arith.addf %59, %60 : vector<1x128xf32>
    %62 = arith.addf %58, %61 : vector<1x128xf32>
    %c0_33 = arith.constant 0 : index
    %c0_34 = arith.constant 0 : index
    %c0_35 = arith.constant 0 : index
    %c0_36 = arith.constant 0 : index
    %63 = vector.load %arg8[%c0_33, %c0_34, %c0_35, %c0_36] : memref<1x1x1x128xf32, #tpu.memory_space<vmem>>, vector<1x1x1x128xf32>
    %64 = vector.shape_cast %63 : vector<1x1x1x128xf32> to vector<1x128xf32>
    %65 = vector.shape_cast %62 : vector<1x128xf32> to vector<1x1x1x128xf32>
    tpu.vector_store %arg8[%c0_33, %c0_34, %c0_35, %c0_36], %65 {strides = array<i32>} : memref<1x1x1x128xf32, #tpu.memory_space<vmem>>, vector<1x1x1x128xf32>,
    return
  }
  func.func @transform_0(%arg0: i32, %arg1: i32, %arg2: i32) -> (i32, i32, i32) {
    %c1_i32 = arith.constant 1 : i32
    %0 = arith.muli %arg1, %c1_i32 : i32
    %1 = arith.addi %0, %arg2 : i32
    %c0_i32 = arith.constant 0 : i32
    %2 = arith.minsi %1, %c0_i32 : i32
    %c0_i32_0 = arith.constant 0 : i32
    %c0_i32_1 = arith.constant 0 : i32
    return %arg0, %c0_i32_0, %2 : i32, i32, i32
  }
  func.func @transform_1(%arg0: i32, %arg1: i32, %arg2: i32) -> (i32, i32, i32) {
    %c1_i32 = arith.constant 1 : i32
    %0 = arith.muli %arg1, %c1_i32 : i32
    %1 = arith.addi %0, %arg2 : i32
    %c0_i32 = arith.constant 0 : i32
    %2 = arith.minsi %1, %c0_i32 : i32
    %c0_i32_0 = arith.constant 0 : i32
    %c0_i32_1 = arith.constant 0 : i32
    return %arg0, %c0_i32_0, %2 : i32, i32, i32
  }
  func.func @transform_2(%arg0: i32, %arg1: i32, %arg2: i32) -> (i32, i32, i32) {
    %c1_i32 = arith.constant 1 : i32
    %0 = arith.muli %arg1, %c1_i32 : i32
    %1 = arith.addi %0, %arg2 : i32
    %c0_i32 = arith.constant 0 : i32
    %2 = arith.minsi %1, %c0_i32 : i32
    %c0_i32_0 = arith.constant 0 : i32
    %c0_i32_1 = arith.constant 0 : i32
    return %arg0, %c0_i32_0, %2 : i32, i32, i32
  }
  func.func @transform_3(%arg0: i32, %arg1: i32, %arg2: i32) -> (i32, i32, i32, i32) {
    %c0_i32 = arith.constant 0 : i32
    %c0_i32_0 = arith.constant 0 : i32
    %c0_i32_1 = arith.constant 0 : i32
    return %arg0, %arg1, %c0_i32, %c0_i32_0 : i32, i32, i32, i32
  }
  func.func @transform_4(%arg0: i32, %arg1: i32, %arg2: i32) -> (i32, i32, i32, i32) {
    %c0_i32 = arith.constant 0 : i32
    %c0_i32_0 = arith.constant 0 : i32
    %c0_i32_1 = arith.constant 0 : i32
    return %arg0, %arg1, %c0_i32, %c0_i32_0 : i32, i32, i32, i32
  }
  func.func @transform_5(%arg0: i32, %arg1: i32, %arg2: i32) -> (i32, i32, i32, i32) {
    %c0_i32 = arith.constant 0 : i32
    %c0_i32_0 = arith.constant 0 : i32
    %c0_i32_1 = arith.constant 0 : i32
    return %arg0, %arg1, %c0_i32, %c0_i32_0 : i32, i32, i32, i32
  }
}

</mosaic_0001>

<bundles_post_ra>
// kernel: tpu_custom_call.1
= control target key start
LH: loop header
LB: loop body
LE: loop exit
PB: predicated region body
PF: predicated region fallthrough
CT: control target
= control target key end

     0   :  { %s1473_s0 = inlined_call_operand.hbm [shape: f32[2,4,256], index: 0, kind: input, shape index: {}]   ;;  %s1474_s1 = inlined_call_operand.hbm [shape: s32[2,1,256], index: 1, kind: input, shape index: {}]   ;;  %s1475_s2 = inlined_call_operand.hbm [shape: f32[2,1,256], index: 2, kind: input, shape index: {}]   ;;  %s1476_s3 = inlined_call_operand.hbm [shape: f32[2,1,4,128], index: 3, kind: output, shape index: {0}]   ;;  %s1477_s4 = inlined_call_operand.hbm [shape: f32[2,1,4,128], index: 4, kind: output, shape index: {1}]   ;;  %s1478_s5 = inlined_call_operand.hbm [shape: f32[2,1,1,128], index: 5, kind: output, shape index: {2}]  }
   0x1   :  { %1483 = sst [smem:[#allocation20_spill]] %s1474_s1 }
   0x2   :  { %1484 = sst [smem:[#allocation21_spill]] %s1475_s2 }
   0x3   :  { %11 = vsyncpa [#allocation3], 0 }
   0x4   :  { %13 = vsyncpa [#allocation3 + $0x1], 0 }
   0x5   :  { %14 = vsyncpa [#allocation6], 0 }
   0x6   :  { %16 = vsyncpa [#allocation6 + $0x1], 0 }
   0x7   :  { %17 = vsyncpa [#allocation4], 0 }
   0x8   :  { %19 = vsyncpa [#allocation4 + $0x1], 0 }
   0x9   :  { %20 = vsyncpa [#allocation10], 0 }
   0xa   :  { %22 = vsyncpa [#allocation10 + $0x1], 0  ;;  %s1160_s18 = smov 0   ;;  %s1162_s19 = smov 0  }
   0xb   :  { %s1164_s20 = smov 0   ;;  %s1166_s21 = smov 0  }
   0xc   :  { %s1168_s22 = smov 0   ;;  %s1170_s23 = smov 0  }
   0xd LB: > { %1485 = sst [smem:[#allocation16_spill]] %s1109_s20  ;;  %s1191_s24 = sadd.s32 4294967295, %s1121_s23   ;;  %s1121_s23 = sphi %s1170_s23, %s28_s23   ;;  %s1117_s22 = sphi %s1168_s22, %s1504_s22   ;;  %s1113_s21 = sphi %s1166_s21, %s1503_s21   ;;  %s1109_s20 = sphi %s1164_s20, %s1502_s20   ;;  %s1105_s19 = sphi %s1162_s19, %s1506_s19   ;;  %s1101_s18 = sphi %s1160_s18, %s1505_s18  }
   0xe   : > { %1486 = sst [smem:[#allocation17_spill]] %s1117_s22  ;;  %s1479_s25 = sadd.s32 4294967294, %s1121_s23  }
   0xf   : > { %s47_s26 = sadd.s32 1, %s1117_s22  ;;  %s62_s27 = sadd.s32 1, %s1109_s20 }
  0x10   : > { %p49_p0 = scmp.ge.s32.totalorder %s47_s26, 2  ;;  %p69_p1 = scmp.ne.s32.totalorder %s1109_s20, %s1105_s19 }
  0x11   : > { %p70_p2 = scmp.eq.s32.totalorder %s1121_s23, 0  ;;  %p75_p3 = scmp.ne.s32.totalorder %s1105_s19, %s1101_s18 }
  0x12   : > { %s1508_s26 = smov (%p49_p0, %s47_s26), 0  ;;  %p76_p5 = scmp.eq.s32.totalorder %s1191_s24, 0 }
  0x13   : > { %1487 = sst [smem:[#allocation18_spill]] %s1508_s26  ;;  %p1203_p4 = por %p70_p2, %p69_p1 }
  0x14   : > { %s57_s29 = ssub.s32 %s1117_s22, %s1508_s26  ;;  %p169_p6 = scmp.eq.s32.totalorder %s1191_s24, 1 }
  0x15   : > { %p60_p7 = scmp.eq.s32.totalorder %s57_s29, 0  ;;  %p1211_p8 = por %p76_p5, %p75_p3 }
  0x16   : > { %p1215_p9 = por %p169_p6, %p69_p1  ;;  %p175_p10 = scmp.eq.s32.totalorder %s1479_s25, 1 }
  0x17   : > { %s1222_s7 = scalar_select %p60_p7, %s1109_s20, %s62_s27  }
  0x18   : > { %p1224_p11 = por %p175_p10, %p75_p3  ;;  %p839_p13 = scmp.lt.s32.totalorder %s1121_s23, 2 }
  0x19   : > { %1491 = sst [smem:[#allocation19_spill]] %s1222_s7  ;;  %s1231_s9 = sand.u32 1, %s1109_s20  }
  0x1a   : > { %s275_s10 = sand.u32 1, %s1121_s23   ;;  %s783_s11 = sshll.u32 %s1231_s9, 1 }
  0x1b   : > { %p1237_p0 = pnand %p839_p13, %p1203_p4  ;;  %s805_s13 = sshll.u32 %s1117_s22, 5 }
  0x1c   : > { %s1494_s1 = sld [smem:[#allocation20_spill]]  ;;  %s279_s17 = scalar_lea.vmem [#allocation5], %s783_s11 }
  0x1d   : > { %s292_s27 = sshll.u32 %s279_s17, 4  ;;  %s1495_s2 = sld [smem:[#allocation21_spill]]  ;;  %s293_s27 = int_to_ptr.vmem [resolvable:$true] %s292_s27 }
  0x1e   : > { %s1252_s28 = scalar_lea.sflag [#allocation6], %s275_s10  ;;  %p899_p1 = pneg %p1237_p0 }
  0x1f   : > { %s910_s7 = scalar_lea.vmem %s293_s27, 32  ;;  %s1123_s14 = smov [#allocation5]  }
  0x20   : > { %p911_p2 = scmp.ne.s32.totalorder %s293_s27, %s910_s7  ;;  %s915_s15 = sshll.u32 %s1123_s14, 4  ;;  %s916_s15 = int_to_ptr.vmem [resolvable:$false] %s915_s15 }
  0x21   : > { %s917_s17 = scalar_lea.vmem %s916_s15, 64  ;;  %p918_p5 = scmp.lt.s32.totalorder %s293_s27, %s916_s15 }
  0x22   : > { %s290_s16 = scalar_lea.hbm %s1494_s1, %s805_s13  ;;  %p913_p3 = pnand %p911_p2, %p899_p1 }
  0x23   : > { %s1250_s26 = scalar_lea.hbm %s1495_s2, %s805_s13  ;;  %p919_p6 = scmp.lt.s32.totalorder %s917_s17, %s910_s7 }
  0x24   : > { %p914_p4 = pneg %p913_p3 }
  0x25   : > { %p920_p7 = por %p919_p6, %p918_p5 }
  0x27   : > { %p921_p10 = pnand %p920_p7, %p914_p4 }
  0x29   : > { %924 = shalt.err (!%p921_p10)
}
  0x2a   : > { %825 = dma.hbm_to_vmem [thread:$0]  (!%p1237_p0), %s290_s16, 32, %s293_s27, %s1252_s28  }
  0x2b   : > { %p789_p13 = scmp.ge.s32.totalorder %s1121_s23, 1  ;;  %p321_p2 = scmp.lt.s32.totalorder %s1121_s23, 3 }
  0x2c   : > { %s780_s7 = sshll.u32 %s1231_s9, 3  ;;  %s804_s10 = sshll.u32 %s1117_s22, 7 }
  0x2d   : > { %p1264_p3 = pnand %p789_p13, %p321_p2  ;;  %s266_s14 = scalar_lea.hbm %s1473_s0, %s804_s10 }
  0x2e   : > { %s255_s15 = scalar_lea.vmem [#allocation2], %s780_s7  ;;  %s303_s1 = scalar_lea.vmem [#allocation7], %s783_s11 }
  0x2f   : > { %s268_s17 = sshll.u32 %s255_s15, 4  ;;  %s316_s2 = sshll.u32 %s303_s1, 4  ;;  %s269_s17 = int_to_ptr.vmem [resolvable:$true] %s268_s17  ;;  %s1275_s2 = int_to_ptr.vmem [resolvable:$true] %s316_s2 }
  0x30   : > { %s252_s16 = scalar_lea.sflag [#allocation3], %s1231_s9  ;;  %s938_s27 = scalar_lea.vmem %s269_s17, 128 }
  0x31   : > { %p939_p4 = scmp.ne.s32.totalorder %s269_s17, %s938_s27  ;;  %s1124_s22 = smov [#allocation2]  }
  0x32   : > { %s943_s20 = sshll.u32 %s1124_s22, 4  ;;  %s944_s20 = int_to_ptr.vmem [resolvable:$false] %s943_s20 }
  0x33   : > { %p941_p5 = pnand %p939_p4, %p899_p1  ;;  %s945_s13 = scalar_lea.vmem %s944_s20, 256 }
  0x34   : > { %p946_p7 = scmp.lt.s32.totalorder %s269_s17, %s944_s20  ;;  %p947_p10 = scmp.lt.s32.totalorder %s945_s13, %s938_s27 }
  0x35   : > { %p942_p6 = pneg %p941_p5 }
  0x36   : > { %p948_p13 = por %p947_p10, %p946_p7 }
  0x38   : > { %p949_p2 = pnand %p948_p13, %p942_p6 }
  0x3a   : > { %952 = shalt.err (!%p949_p2)
}
  0x3b   : > { %822 = dma.hbm_to_vmem [thread:$0]  (!%p1237_p0), %s266_s14, 128, %s269_s17, %s252_s16  }
  0x3c   : > { %s966_s1 = scalar_lea.vmem %s1275_s2, 32  ;;  %s1125_s22 = smov [#allocation7]  }
  0x3d   : > { %p967_p12 = scmp.ne.s32.totalorder %s1275_s2, %s966_s1  ;;  %s971_s9 = sshll.u32 %s1125_s22, 4  ;;  %s972_s9 = int_to_ptr.vmem [resolvable:$false] %s971_s9 }
  0x3e   : > { %s973_s20 = scalar_lea.vmem %s972_s9, 64  ;;  %p974_p7 = scmp.lt.s32.totalorder %s1275_s2, %s972_s9 }
  0x3f   : > { %p969_p4 = pnand %p967_p12, %p899_p1  ;;  %p975_p6 = scmp.lt.s32.totalorder %s973_s20, %s966_s1 }
  0x41   : > { %p970_p5 = pneg %p969_p4  ;;  %p976_p10 = por %p975_p6, %p974_p7 }
  0x43   : > { %p977_p13 = pnand %p976_p10, %p970_p5 }
  0x45   : > { %980 = shalt.err (!%p977_p13)
}
  0x46   : > { %828 = dma.hbm_to_vmem [thread:$0]  (!%p1237_p0), %s1250_s26, 32, %s1275_s2, %s1252_s28  }
  0x47   : > { %325 = sbr.rel (%p1264_p3) target bundleno = 204 (0xcc), region = 32  ;;  %s1297_s11 = sand.u32 (!%p1264_p3), 1, %s1105_s19  }
  0x48   : > { %s790_s7 = sshll.u32 (!%p1264_p3), %s1297_s11, 3  ;;  %s328_s10 = scalar_lea.sflag (!%p1264_p3), [#allocation3], %s1297_s11 }
  0x49   : > { %s331_s29 = scalar_lea.vmem (!%p1264_p3), [#allocation2], %s790_s7 }
  0x4c   : > { %1084 = dma.done.wait (%p1211_p8), %s328_s10, 128  }
  0x4d   : > { %1086 = vsyncadd (%p1211_p8), %s328_s10, 4294967168  ;;  %s336_s2 = sand.u32 1, %s1191_s24   ;;  %s791_s26 = sshll.u32 %s1297_s11, 1 }
  0x4e   : > { %s337_s12 = scalar_lea.sflag [#allocation6], %s336_s2  ;;  %s340_s28 = scalar_lea.vmem [#allocation5], %s791_s26 }
  0x4f   : > { %1088 = dma.done.wait (%p1211_p8), %s337_s12, 64  }
  0x50   : > { %1090 = vsyncadd (%p1211_p8), %s337_s12, 4294967232  ;;  %s793_s25 = sshll.u32 %s1297_s11, 2  ;;  %v473_v0 = vlaneseq  ;;  %s1315_s14 = scalar_lea.vmem [#allocation11], %s1297_s11  ;;  %v1126_v1 = vmov 0.0   ;;  %vm430_vm0 = vcmask 1043456   ;;  %v1328_v6 = vld [vmem:[%s331_s29] sm:$0xff] }
  0x51   : > { %413 = vst [vmem:[%s1315_s14] sm:$0x1] %v1126_v1  ;;  %s1318_s15 = scalar_lea.vmem [#allocation9], %s793_s25  ;;  %s1321_s17 = scalar_lea.vmem [#allocation8], %s793_s25  ;;  %v415_v5 = vld [vmem:[%s340_s28] sm:$0x3]  ;;  %v428_v10 = vcombine.high %v1328_v6, %v1328_v6  ;;  %v431_v11 = vsel %vm430_vm0, %v1328_v6, -inf }
  0x52   : > { %412 = vst [vmem:[%s1318_s15] sm:$0xf] %v1126_v1  ;;  %411 = vst [vmem:[%s1321_s17] sm:$0xf] %v1126_v1  ;;  %v1324_v2 = vshrl.u32 %v473_v0, 7  ;;  %s349_s30 = scalar_lea.vmem [#allocation7], %s791_s26  ;;  %v432_v12 = vrot.slane %v431_v11, 4  ;;  %s799_s16 = sshll.u32 %s1113_s21, 6 }
  0x53   : > { %v416_v7 = vld [vmem:[%s349_s30] sm:$0x3]  ;;  %v438_v17 = vsel %vm430_vm0, %v428_v10, -inf  ;;  %s569_s27 = sshll.u32 %s1318_s15, 4  ;;  %s583_s13 = sshll.u32 %s1315_s14, 4  ;;  %s1363_s27 = int_to_ptr.vmem [resolvable:$true] %s569_s27  ;;  %s1365_s13 = int_to_ptr.vmem [resolvable:$true] %s583_s13 }
  0x54   : > { %v477_v3 = vsub.s32 0, %v1324_v2  ;;  %v481_v4 = vsub.s32 1, %v1324_v2  ;;  %v433_v18 = vmax.f32 %v431_v11, %v432_v12  ;;  %v439_v19 = vrot.slane %v438_v17, 4  ;;  %s801_s1 = sshll.u32 %s1113_s21, 4  ;;  %s1361_s20 = scalar_lea.hbm %s1477_s4, %s799_s16 }
  0x55   : > { %s1370_s29 = scalar_lea.hbm %s1478_s5, %s801_s1  ;;  %s1375_s26 = scalar_lea.sflag [#allocation10], %s336_s2 }
  0x56   : > { %v478_v8 = vrot.slane %v415_v5, %v477_v3  ;;  %v482_v9 = vrot.slane %v415_v5, %v481_v4  ;;  %v510_v13 = vrot.slane %v416_v7, %v477_v3  ;;  %v514_v14 = vrot.slane %v416_v7, %v481_v4  ;;  %s981_s12 = scalar_lea.vmem %s1363_s27, 64  ;;  %s1127_s28 = smov [#allocation9]  }
  0x57   : > { %v434_v26 = vrot.slane %v433_v18, 2  ;;  %v440_v27 = vmax.f32 %v438_v17, %v439_v19  ;;  %p982_p8 = scmp.ne.s32.totalorder %s1363_s27, %s981_s12  ;;  %s985_s25 = sshll.u32 %s1127_s28, 4  ;;  %s986_s25 = int_to_ptr.vmem [resolvable:$false] %s985_s25 }
  0x58   : > { %v1334_v15 = vrot.slane %v478_v8, %v477_v3  ;;  %v492_v16 = vrot.slane %v482_v9, %v477_v3  ;;  %v527_v20 = vld [vmem:[%s1315_s14] sm:$0x1]  ;;  %v528_v21 = vadd.f32 %v514_v14, %v510_v13  ;;  %p988_p1 = scmp.lt.s32.totalorder %s1363_s27, %s986_s25 }
  0x59   : > { %v523_v25 = vld [vmem:[%s1318_s15] sm:$0xf]  ;;  %v435_v30 = vmax.f32 %v433_v18, %v434_v26  ;;  %v441_v31 = vrot.slane %v440_v27, 2  ;;  %p983_p12 = pnand %p982_p8, %p1215_p9 }
  0x5a   : > { %vm493_vm1 = vcmp.eq.s32.totalorder %v1324_v2, %v1334_v15  ;;  %vm1341_vm2 = vcmp.eq.s32.totalorder %v1324_v2, %v492_v16  ;;  %v529_v29 = vadd.f32 %v528_v21, %v527_v20 }
  0x5b   : > { %v795_v23 = vsel %vm493_vm1, 1.0, %v1126_v1  ;;  %v796_v24 = vsel %vm1341_vm2, 1.0, %v1126_v1  ;;  %v436_v33 = vrot.slane %v435_v30, 1  ;;  %v442_v34 = vmax.f32 %v440_v27, %v441_v31  ;;  %p984_p0 = pneg %p983_p12 }
  0x5c   : > { %v524_v28 = vadd.f32 %v796_v24, %v795_v23  ;;  %530 = vst [vmem:[%s1315_s14] sm:$0x1] %v529_v29  ;;  %s987_s14 = scalar_lea.vmem %s986_s25, 128 }
  0x5d   : > { %v437_v35 = vmax.f32 %v435_v30, %v436_v33  ;;  %v443_v36 = vrot.slane %v442_v34, 1  ;;  %p989_p3 = scmp.lt.s32.totalorder %s987_s14, %s981_s12 }
  0x5e   : > { %v525_v32 = vadd.f32 %v524_v28, %v523_v25 }
  0x5f   : > { %p990_p2 = por %p989_p3, %p988_p1 }
  0x60   : > { %526 = vst [vmem:[%s1318_s15] sm:$0xf] %v525_v32 }
  0x61   : > { %p991_p4 = pnand %p990_p2, %p984_p0 }
  0x63   : > { %994 = shalt.err (!%p991_p4)
}
  0x64   : > { %s995_s24 = scalar_lea.hbm %s1361_s20, 64  ;;  %s999_s30 = scalar_lea.hbm %s1477_s4, 128 }
  0x65   : > { %p996_p5 = scmp.ne.s32.totalorder %s1361_s20, %s995_s24  ;;  %p1000_p10 = scmp.lt.s32.totalorder %s1361_s20, %s1477_s4 }
  0x66   : > { %p1001_p13 = scmp.lt.s32.totalorder %s999_s30, %s995_s24 }
  0x67   : > { %p997_p7 = pnand %p996_p5, %p1215_p9 }
  0x68   : > { %p1002_p8 = por %p1001_p13, %p1000_p10 }
  0x69   : > { %p998_p6 = pneg %p997_p7 }
  0x6b   : > { %p1003_p12 = pnand %p1002_p8, %p998_p6 }
  0x6d   : > { %1006 = shalt.err (!%p1003_p12)
}
  0x6e   : > { %814 = dma.vmem_to_hbm [thread:$0]  (%p1215_p9), %s1363_s27, 64, %s1361_s20, %s1375_s26  }
  0x6f   : > { %s1007_s9 = scalar_lea.vmem %s1365_s13, 16  ;;  %s1128_s7 = smov [#allocation11]  }
  0x70   : > { %p1008_p0 = scmp.ne.s32.totalorder %s1365_s13, %s1007_s9  ;;  %s1011_s10 = sshll.u32 %s1128_s7, 4  ;;  %s1012_s10 = int_to_ptr.vmem [resolvable:$false] %s1011_s10 }
  0x71   : > { %s1013_s12 = scalar_lea.vmem %s1012_s10, 32  ;;  %p1014_p2 = scmp.lt.s32.totalorder %s1365_s13, %s1012_s10 }
  0x72   : > { %p1009_p1 = pnand %p1008_p0, %p1215_p9  ;;  %p1015_p4 = scmp.lt.s32.totalorder %s1013_s12, %s1007_s9 }
  0x74   : > { %p1010_p3 = pneg %p1009_p1  ;;  %p1016_p5 = por %p1015_p4, %p1014_p2 }
  0x76   : > { %p1017_p7 = pnand %p1016_p5, %p1010_p3 }
  0x78   : > { %1020 = shalt.err (!%p1017_p7)
}
  0x79   : > { %s1021_s28 = scalar_lea.hbm %s1370_s29, 16  ;;  %s1025_s25 = scalar_lea.hbm %s1478_s5, 32 }
  0x7a   : > { %p1022_p6 = scmp.ne.s32.totalorder %s1370_s29, %s1021_s28  ;;  %p1026_p8 = scmp.lt.s32.totalorder %s1370_s29, %s1478_s5 }
  0x7b   : > { %p1027_p12 = scmp.lt.s32.totalorder %s1025_s25, %s1021_s28 }
  0x7c   : > { %p1023_p10 = pnand %p1022_p6, %p1215_p9 }
  0x7d   : > { %p1028_p0 = por %p1027_p12, %p1026_p8 }
  0x7e   : > { %p1024_p13 = pneg %p1023_p10 }
  0x80   : > { %p1029_p1 = pnand %p1028_p0, %p1024_p13 }
  0x82   : > { %1032 = shalt.err (!%p1029_p1)
}
  0x83   : > { %815 = dma.vmem_to_hbm [thread:$0]  (%p1215_p9), %s1365_s13, 16, %s1370_s29, %s1375_s26   ;;  %v444_v37 = vmax.f32 %v442_v34, %v443_v36  ;;  %v519_v3 = vld [vmem:[%s1321_s17] sm:$0xf] }
  0x84   : > { %s555_s13 = sshll.u32 %s1321_s17, 4  ;;  %s553_s2 = scalar_lea.hbm %s1476_s3, %s799_s16  ;;  %s556_s13 = int_to_ptr.vmem [resolvable:$true] %s555_s13 }
  0x85   : > { %v447_v38 = vcombine.low %v437_v35, %v444_v37  ;;  %s532_s15 = scalar_lea.sflag [#allocation4], %s1297_s11  ;;  %s1033_s30 = scalar_lea.vmem %s556_s13, 64 }
  0x86   : > { %p1034_p3 = scmp.ne.s32.totalorder %s556_s13, %s1033_s30  ;;  %s1129_s1 = smov [#allocation8]  }
  0x87   : > { %v449_v39 = vsub.f32 %v1328_v6, %v447_v38  ;;  %s1037_s22 = sshll.u32 %s1129_s1, 4  ;;  %s1038_s22 = int_to_ptr.vmem [resolvable:$false] %s1037_s22 }
  0x88   : > { %p1035_p2 = pnand %p1034_p3, %p1215_p9  ;;  %s1039_s9 = scalar_lea.vmem %s1038_s22, 128 }
  0x89   : > { %v450_v40 = vmul.f32 1.442695, %v449_v39  ;;  %v496_v59 = vcombine.high %v449_v39, %v449_v39  ;;  %p1040_p5 = scmp.lt.s32.totalorder %s556_s13, %s1038_s22  ;;  %p1041_p7 = scmp.lt.s32.totalorder %s1039_s9, %s1033_s30 }
  0x8a   : > { %p1036_p4 = pneg %p1035_p2 }
  0x8b   : > { %891 = vpow2.f32 %v450_v40  ;;  %p1042_p6 = por %p1041_p7, %p1040_p5 }
  0x8d   : > { %p1043_p10 = pnand %p1042_p6, %p1036_p4 }
  0x98   : > { %v892_v41 = vpop.eup %891 }
  0x99   : > { %v453_v42 = vcombine.high %v892_v41, %v892_v41  ;;  %v455_v43 = vsel %vm430_vm0, %v892_v41, 0.0 }
  0x9a   : > { %v456_v44 = vrot.slane %v455_v43, 4 }
  0x9b   : > { %v462_v45 = vsel %vm430_vm0, %v453_v42, 0.0 }
  0x9c   : > { %v457_v46 = vadd.f32 %v456_v44, %v455_v43  ;;  %v463_v47 = vrot.slane %v462_v45, 4 }
  0x9e   : > { %v458_v48 = vrot.slane %v457_v46, 2  ;;  %v464_v49 = vadd.f32 %v463_v47, %v462_v45 }
  0xa0   : > { %v459_v50 = vadd.f32 %v458_v48, %v457_v46  ;;  %v465_v51 = vrot.slane %v464_v49, 2 }
  0xa2   : > { %v460_v52 = vrot.slane %v459_v50, 1  ;;  %v466_v53 = vadd.f32 %v465_v51, %v464_v49 }
  0xa4   : > { %v461_v54 = vadd.f32 %v460_v52, %v459_v50  ;;  %v467_v55 = vrot.slane %v466_v53, 1 }
  0xa6   : > { %v468_v56 = vadd.f32 %v467_v55, %v466_v53  ;;  %893 = vlog2.f32 %v461_v54 }
  0xa8   : > { %895 = vlog2.f32 %v468_v56 }
  0xb3   : > { %v894_v57 = vpop.eup %893 }
  0xb4   : > { %v470_v58 = vmul.f32 0.6931472, %v894_v57 }
  0xb5   : > { %v896_v60 = vpop.eup %895 }
  0xb6   : > { %v472_v61 = vmul.f32 0.6931472, %v896_v60  ;;  %v498_v62 = vsub.f32 %v470_v58, %v449_v39 }
  0xb8   : > { %v499_v63 = vsub.f32 %v472_v61, %v496_v59  ;;  %v500_v0 = vsel %vm493_vm1, %v498_v62, 0.0 }
  0xba   : > { %v501_v1 = vsel %vm1341_vm2, %v499_v63, 0.0 }
  0xbb   : > { %v520_v4 = vadd.f32 %v501_v1, %v500_v0 }
  0xbd   : > { %v521_v5 = vadd.f32 %v520_v4, %v519_v3 }
  0xbf   : > { %522 = vst [vmem:[%s1321_s17] sm:$0xf] %v521_v5 }
  0xc0   : > { %1046 = shalt.err (!%p1043_p10)
}
  0xc1   : > { %s1047_s21 = scalar_lea.hbm %s553_s2, 64  ;;  %s1051_s16 = scalar_lea.hbm %s1476_s3, 128 }
  0xc2   : > { %p1048_p13 = scmp.ne.s32.totalorder %s553_s2, %s1047_s21  ;;  %p1052_p0 = scmp.lt.s32.totalorder %s553_s2, %s1476_s3 }
  0xc3   : > { %p1053_p1 = scmp.lt.s32.totalorder %s1051_s16, %s1047_s21 }
  0xc4   : > { %p1049_p8 = pnand %p1048_p13, %p1215_p9 }
  0xc5   : > { %p1054_p3 = por %p1053_p1, %p1052_p0 }
  0xc6   : > { %p1050_p12 = pneg %p1049_p8 }
  0xc8   : > { %p1055_p2 = pnand %p1054_p3, %p1050_p12 }
  0xca   : > { %1058 = shalt.err (!%p1055_p2)
}
  0xcb   : > { %813 = dma.vmem_to_hbm [thread:$0]  (%p1215_p9), %s556_s13, 64, %s553_s2, %s532_s15  }
  0xcc PF: > { %s595_s12 = sand.u32 1, %s1101_s18   ;;  %p1499_p4 = scmp.ge.s32.totalorder %s1121_s23, 2 }
  0xcd   : > { %s596_s28 = scalar_lea.sflag [#allocation4], %s595_s12 }
  0xce   : > { %p830_p5 = pnand %p1499_p4, %p1224_p11 }
  0xd0   : > { %p831_p7 = pneg %p830_p5 }
  0xd2   : > { %1092 = dma.done.wait (%p831_p7), %s596_s28, 64  }
  0xd3   : > { %1094 = vsyncadd (%p831_p7), %s596_s28, 4294967232  ;;  %s1500_s27 = sadd.s32 4294967294, %s1121_s23  }
  0xd4   : > { %s604_s20 = sand.u32 1, %s1500_s27  }
  0xd5   : > { %s605_s25 = scalar_lea.sflag [#allocation10], %s604_s20 }
  0xd6   : > { %1096 = dma.done.wait (%p831_p7), %s605_s25, 80  }
  0xd7   : > { %1098 = vsyncadd (%p831_p7), %s605_s25, 4294967216  ;;  %s28_s23 = sadd.s32 1, %s1121_s23   ;;  %s1501_s6 = sld [smem:[#allocation16_spill]] }
  0xd8   : > { %p25_p9 = scmp.ge.s32.totalorder %s28_s23, 4   ;;  %s1502_s20 = sld [smem:[#allocation19_spill]] }
  0xd9   : > { %s1503_s21 = sld [smem:[#allocation17_spill]]  ;;  %s1505_s18 = smov %s1105_s19 }
  0xda   : > { %s1504_s22 = sld [smem:[#allocation18_spill]]  ;;  %27 = sbr.rel (!%p25_p9) target bundleno = 13 (0xd), region = 137 }
  0xdd   : > { %s1506_s19 = smov %s1501_s6 }
  0xdf   :  { %618 = vsyncpa [#allocation3], 1 }
  0xe0   :  { %620 = vsyncpa [#allocation3 + $0x1], 1 }
  0xe1   :  { %621 = vsyncpa [#allocation6], 1 }
  0xe2   :  { %623 = vsyncpa [#allocation6 + $0x1], 1 }
  0xe3   :  { %624 = vsyncpa [#allocation4], 1 }
  0xe4   :  { %626 = vsyncpa [#allocation4 + $0x1], 1 }
  0xe5   :  { %627 = vsyncpa [#allocation10], 1 }
  0xe6   :  { %629 = vsyncpa [#allocation10 + $0x1], 1 }

</bundles_post_ra>
